<compile_context>
chip_gen: v7x
topology: tpu7x:2x2x1
jax: 0.10.0
libtpu: 0.0.40
codegen_flags: <defaults>
</compile_context>

<pallas_src>
import jax
import jax.numpy as jnp
from jax import lax
from jax.experimental import pallas as pl
from jax.experimental.pallas import tpu as pltpu

# Up to this many batch rows the whole problem is one resident VMEM block
# (no grid at all).  Working set at 4096 rows is ~1.3 MiB — far below the
# scoped-VMEM limit on every generation (16/32/32 MiB on v5e/v6e/v7x).
_GRID_FREE_MAX_BATCH = 4096


def _round_up(x, m):
    return ((x + m - 1) // m) * m


def _mlp_controller_kernel(x_ref, w1_ref, b1_ref, w2_ref, b2_ref,
                           w3_ref, b3_ref, o_ref):
    """Fused 3-layer masked MLP.

    Intermediates are (features, batch) with batch on the 128-lane axis
    (lane-dense tanh / h1 / h2); the input tile stays batch-major and the
    small final transpose back to batch-major happens in-kernel, so no HBM
    relayout is ever needed outside the kernel.
    """
    x = x_ref[...]                                           # (tb, n_in)
    # h1 = W1 @ x^T : contract x's feature axis directly (no HBM transpose).
    h1 = jnp.tanh(
        lax.dot_general(w1_ref[...], x, (((1,), (1,)), ((), ())),
                        preferred_element_type=jnp.float32)
        + b1_ref[...])                                       # (h1f, tb)
    h2 = jnp.tanh(
        jnp.dot(w2_ref[...], h1, preferred_element_type=jnp.float32)
        + b2_ref[...])                                       # (h2f, tb)
    oT = (jnp.dot(w3_ref[...], h2, preferred_element_type=jnp.float32)
          + b3_ref[...])                                     # (n_out, tb)
    # Tiny in-kernel XLU transpose so the HBM output is already batch-major.
    o_ref[...] = oT.T                                        # (tb, n_out)


def make_mlp_controller_params(key, interconnection):
    """Deterministic parameter construction mirroring MLP_Controller.__init__."""
    n_agents = interconnection.shape[0]
    in_size = 2
    l0, l1, l2, l3 = in_size, 4 * in_size, 4 * in_size, in_size

    mask1 = jnp.kron(interconnection.T, jnp.ones((l1, l0), jnp.float32))
    mask2 = jnp.kron(jnp.eye(n_agents, dtype=jnp.float32),
                     jnp.ones((l2, l1), jnp.float32))
    mask3 = jnp.kron(jnp.eye(n_agents, dtype=jnp.float32),
                     jnp.ones((l3, l2), jnp.float32))

    k1, k2, k3, k4, k5, k6 = jax.random.split(key, 6)
    w1 = mask1 * jax.random.normal(k1, (n_agents * l1, n_agents * l0), jnp.float32) / 10.0
    b1 = jax.random.normal(k2, (n_agents * l1,), jnp.float32)
    w2 = mask2 * jax.random.normal(k3, (n_agents * l2, n_agents * l1), jnp.float32) / 10.0
    b2 = jax.random.normal(k4, (n_agents * l2,), jnp.float32)
    w3 = mask3 * jax.random.normal(k5, (n_agents * l3, n_agents * l2), jnp.float32) / 10.0
    b3 = jax.random.normal(k6, (n_agents * l3,), jnp.float32)

    return dict(mask1=mask1, mask2=mask2, mask3=mask3,
                w1=w1, b1=b1, w2=w2, b2=b2, w3=w3, b3=b3)


def prepare_mlp_controller_weights(params):
    """One-time preprocessing hoisted out of the per-step forward.

    Applies the 0/1 masks (idempotent w.r.t. the init-time masking, exactly as
    the PyTorch forward does) and reshapes biases to (out, 1) for lane-wise
    broadcast.  Weights keep the PyTorch (out_features, in_features) layout,
    which is exactly what the lane-dense  W @ x^T  kernel wants.
    """
    return (
        (params["mask1"] * params["w1"]).astype(jnp.float32),
        params["b1"].reshape(-1, 1).astype(jnp.float32),
        (params["mask2"] * params["w2"]).astype(jnp.float32),
        params["b2"].reshape(-1, 1).astype(jnp.float32),
        (params["mask3"] * params["w3"]).astype(jnp.float32),
        params["b3"].reshape(-1, 1).astype(jnp.float32),
    )


# TODO(synk): if the ODE integrator evaluates this controller several times per
# step (RK stages), fuse those sequential evaluations + state updates into one
# pallas_call so the weights stay VMEM-resident and dispatch is paid once —
# that requires the integrator's structure, which lives outside this module.
@jax.jit
def mlp_controller_forward(t, x, prepared):
    """Pallas-backed forward. `t` is accepted (ODE-style API) but unused."""
    del t
    w1, b1, w2, b2, w3, b3 = prepared
    batch, n_in = x.shape
    n_out = w3.shape[0]
    out_shape = jax.ShapeDtypeStruct((batch, n_out), jnp.float32)

    if batch <= _GRID_FREE_MAX_BATCH:
        # One resident block: no grid, no index_maps, no pipeline machinery,
        # and the pallas_call is the only op in this forward.
        return pl.pallas_call(
            _mlp_controller_kernel, out_shape=out_shape,
        )(x, w1, b1, w2, b2, w3, b3)

    # Large batch: tile the batch axis only.  Even tile count so v7x's two
    # TensorCores split the "parallel" grid axis evenly; no host pad / slice —
    # the ragged last block is handled by Pallas' boundary masking.
    num_tiles = pl.cdiv(batch, _GRID_FREE_MAX_BATCH)
    num_tiles += num_tiles % 2
    tb = _round_up(pl.cdiv(batch, num_tiles), 128)

    def _resident(shape):
        # Constant index_map: weights / biases stay resident in VMEM across
        # grid steps (Pallas skips the re-DMA for unchanged block indices).
        return pl.BlockSpec(shape, lambda i: (0, 0))

    return pl.pallas_call(
        _mlp_controller_kernel,
        out_shape=out_shape,
        grid=(pl.cdiv(batch, tb),),
        in_specs=[
            pl.BlockSpec((tb, n_in), lambda i: (i, 0)),
            _resident(w1.shape), _resident(b1.shape),
            _resident(w2.shape), _resident(b2.shape),
            _resident(w3.shape), _resident(b3.shape),
        ],
        out_specs=pl.BlockSpec((tb, n_out), lambda i: (i, 0)),
        compiler_params=pltpu.CompilerParams(
            dimension_semantics=("parallel",)),
    )(x, w1, b1, w2, b2, w3, b3)


def _reference_forward(x, params):
    """Pure-JAX reference mirroring the PyTorch module exactly."""
    h = jnp.tanh(x @ (params["mask1"] * params["w1"]).T + params["b1"])
    h = jnp.tanh(h @ (params["mask2"] * params["w2"]).T + params["b2"])
    return h @ (params["mask3"] * params["w3"]).T + params["b3"]


if __name__ == "__main__":
    key = jax.random.PRNGKey(0)
    kp, kx1, kx2, kx3 = jax.random.split(key, 4)

    # Small deterministic problem: 4 agents in a ring (with self-coupling).
    n_agents = 4
    ring = (jnp.eye(n_agents)
            + jnp.roll(jnp.eye(n_agents), 1, axis=1)
            + jnp.roll(jnp.eye(n_agents), -1, axis=1))
    interconnection = jnp.clip(ring, 0.0, 1.0).astype(jnp.float32)

    params = make_mlp_controller_params(kp, interconnection)
    prepared = prepare_mlp_controller_weights(params)   # hoisted, done once

    n_in = n_agents * 2                                  # in_size = 2 per agent
    t = jnp.float32(0.0)                                 # unused, API parity

    # 1) Small batch -> single resident block (no grid), no host relayout ops.
    x_small = jax.random.normal(kx1, (128, n_in), jnp.float32)
    out_small = jax.block_until_ready(mlp_controller_forward(t, x_small, prepared))
    assert out_small.shape == (128, n_in)
    assert jnp.allclose(out_small, _reference_forward(x_small, params),
                        atol=1e-4, rtol=1e-4)

    # 2) Typical ODE batch -> still the grid-free path (threshold raised).
    x_mid = jax.random.normal(kx2, (1280, n_in), jnp.float32)
    out_mid = jax.block_until_ready(mlp_controller_forward(t, x_mid, prepared))
    assert out_mid.shape == (1280, n_in)
    assert jnp.allclose(out_mid, _reference_forward(x_mid, params),
                        atol=1e-4, rtol=1e-4)

    # 3) Large ragged batch -> tiled "parallel" grid path with an even tile
    #    count (v7x TC balance) and a Pallas-masked last block (no pad/slice).
    x_big = jax.random.normal(kx3, (4100, n_in), jnp.float32)
    out_big = jax.block_until_ready(mlp_controller_forward(t, x_big, prepared))
    assert out_big.shape == (4100, n_in)
    assert jnp.allclose(out_big, _reference_forward(x_big, params),
                        atol=1e-4, rtol=1e-4)

    print("KERNEL_OK")
</pallas_src>

<mosaic_0001>
module attributes {stable_mosaic.version = 11 : i64} {
  func.func @_mlp_controller_kernel(%arg0: memref<128x8xf32, #tpu.memory_space<vmem>>, %arg1: memref<32x8xf32, #tpu.memory_space<vmem>>, %arg2: memref<32x1xf32, #tpu.memory_space<vmem>>, %arg3: memref<32x32xf32, #tpu.memory_space<vmem>>, %arg4: memref<32x1xf32, #tpu.memory_space<vmem>>, %arg5: memref<8x32xf32, #tpu.memory_space<vmem>>, %arg6: memref<8x1xf32, #tpu.memory_space<vmem>>, %arg7: memref<128x8xf32, #tpu.memory_space<vmem>>) attributes {dimension_semantics = [], scalar_prefetch = 0 : i64, scratch_operands = 0 : i64, tpu.core_type = #tpu.core_type<tc>} {
    %c0 = arith.constant 0 : index
    %c0_0 = arith.constant 0 : index
    %0 = vector.load %arg0[%c0, %c0_0] : memref<128x8xf32, #tpu.memory_space<vmem>>, vector<128x8xf32>
    %c0_1 = arith.constant 0 : index
    %c0_2 = arith.constant 0 : index
    %1 = vector.load %arg1[%c0_1, %c0_2] : memref<32x8xf32, #tpu.memory_space<vmem>>, vector<32x8xf32>
    %cst = arith.constant dense<0.000000e+00> : vector<32x128xf32>
    %2 = tpu.matmul %1, %0, %cst {dimension_numbers = #tpu.dot_dimension_numbers<[1], [1], [0], [0], [0, 0, 1, 0], [], []>} : vector<32x8xf32>, vector<128x8xf32>, vector<32x128xf32> -> vector<32x128xf32>
    %c0_3 = arith.constant 0 : index
    %c0_4 = arith.constant 0 : index
    %3 = vector.load %arg2[%c0_3, %c0_4] : memref<32x1xf32, #tpu.memory_space<vmem>>, vector<32x1xf32>
    %4 = vector.broadcast %3 : vector<32x1xf32> to vector<32x128xf32>
    %5 = arith.addf %2, %4 : vector<32x128xf32>
    %6 = math.tanh %5 : vector<32x128xf32>
    %c0_5 = arith.constant 0 : index
    %c0_6 = arith.constant 0 : index
    %7 = vector.load %arg3[%c0_5, %c0_6] : memref<32x32xf32, #tpu.memory_space<vmem>>, vector<32x32xf32>
    %cst_7 = arith.constant dense<0.000000e+00> : vector<32x128xf32>
    %8 = tpu.matmul %7, %6, %cst_7 {dimension_numbers = #tpu.dot_dimension_numbers<[1], [0], [0], [1], [0, 0, 1, 1], [], []>} : vector<32x32xf32>, vector<32x128xf32>, vector<32x128xf32> -> vector<32x128xf32>
    %c0_8 = arith.constant 0 : index
    %c0_9 = arith.constant 0 : index
    %9 = vector.load %arg4[%c0_8, %c0_9] : memref<32x1xf32, #tpu.memory_space<vmem>>, vector<32x1xf32>
    %10 = vector.broadcast %9 : vector<32x1xf32> to vector<32x128xf32>
    %11 = arith.addf %8, %10 : vector<32x128xf32>
    %12 = math.tanh %11 : vector<32x128xf32>
    %c0_10 = arith.constant 0 : index
    %c0_11 = arith.constant 0 : index
    %13 = vector.load %arg5[%c0_10, %c0_11] : memref<8x32xf32, #tpu.memory_space<vmem>>, vector<8x32xf32>
    %cst_12 = arith.constant dense<0.000000e+00> : vector<8x128xf32>
    %14 = tpu.matmul %13, %12, %cst_12 {dimension_numbers = #tpu.dot_dimension_numbers<[1], [0], [0], [1], [0, 0, 1, 1], [], []>} : vector<8x32xf32>, vector<32x128xf32>, vector<8x128xf32> -> vector<8x128xf32>
    %c0_13 = arith.constant 0 : index
    %c0_14 = arith.constant 0 : index
    %15 = vector.load %arg6[%c0_13, %c0_14] : memref<8x1xf32, #tpu.memory_space<vmem>>, vector<8x1xf32>
    %16 = vector.broadcast %15 : vector<8x1xf32> to vector<8x128xf32>
    %17 = arith.addf %14, %16 : vector<8x128xf32>
    %18 = tpu.transpose %17, [1, 0] : vector<8x128xf32> -> vector<128x8xf32>
    %c0_15 = arith.constant 0 : index
    %c0_16 = arith.constant 0 : index
    %19 = vector.load %arg7[%c0_15, %c0_16] : memref<128x8xf32, #tpu.memory_space<vmem>>, vector<128x8xf32>
    tpu.vector_store %arg7[%c0_15, %c0_16], %18 {strides = array<i32>} : memref<128x8xf32, #tpu.memory_space<vmem>>, vector<128x8xf32>,
    return
  }
}

</mosaic_0001>

<bundles_post_ra>
// kernel: mlp_controller_forward.1
= control target key start
LH: loop header
LB: loop body
LE: loop exit
PB: predicated region body
PF: predicated region fallthrough
CT: control target
= control target key end

     0   :  { %vm70_vm0 = vcmask 64512   ;;  %v687_v3 = vmov 0   ;;  %vm248_vm2 = vcmask 261120   ;;  %v688_v61 = vmov 0.0|0.0   ;;  %s944_s0 = inlined_call_operand.vmem [shape: f32[128,8], index: 0, kind: input, shape index: {}]   ;;  %s945_s1 = inlined_call_operand.vmem [shape: f32[32,8], index: 1, kind: input, shape index: {}]   ;;  %s946_s2 = inlined_call_operand.vmem [shape: f32[32,1], index: 2, kind: input, shape index: {}]   ;;  %s947_s4 = inlined_call_operand.vmem [shape: f32[32,1], index: 4, kind: input, shape index: {}]   ;;  %s948_s6 = inlined_call_operand.vmem [shape: f32[8,1], index: 6, kind: input, shape index: {}]   ;;  %s949_s3 = inlined_call_operand.vmem [shape: f32[32,32], index: 3, kind: input, shape index: {}]   ;;  %s950_s5 = inlined_call_operand.vmem [shape: f32[8,32], index: 5, kind: input, shape index: {}]   ;;  %s951_s7 = inlined_call_operand.vmem [shape: f32[128,8], index: 7, kind: output, shape index: {}]  }
   0x1   :  { %v26_v0 = vld [vmem:[%s944_s0] sm:$0xff]  ;;  %v27_v1 = vld [vmem:[%s944_s0 + $0x8] sm:$0xff]  ;;  %vm739_vm1 = vmpackc.low %vm70_vm0, %vm70_vm0  ;;  %669 = vset.pattern.permute.xlu0 %v687_v3  ;;  %670 = vset.pattern.permute.xlu1 %v687_v3  ;;  %vm689_vm3 = vmmov 0   ;;  %v690_v62 = vmov 0.0  }
   0x2   :  { %v603_v4 = vpack.c.bf16 %v27_v1, %v26_v0  ;;  %v28_v5 = vld [vmem:[%s944_s0 + $0x10] sm:$0xff]  ;;  %v29_v6 = vld [vmem:[%s944_s0 + $0x18] sm:$0xff]  ;;  %v42_v8 = vld [vmem:[%s945_s1] sm:$0xff] }
   0x3   :  { %v609_v7 = vpack.c.bf16 %v29_v6, %v28_v5  ;;  %v30_v9 = vld [vmem:[%s944_s0 + $0x20] sm:$0xff]  ;;  %v31_v10 = vld [vmem:[%s944_s0 + $0x28] sm:$0xff]  ;;  %572 = vmatprep.mubr.msk.f32.mxu0 %vm70_vm0, %v42_v8  ;;  %v48_v12 = vld [vmem:[%s946_s2 + $0x10] sm:$0xff] }
   0x4   :  { %605 = vmatprep.subr.msk.bf16.mxu0 %vm739_vm1, %v603_v4  ;;  %v46_v11 = vld [vmem:[%s946_s2] sm:$0xff]  ;;  %62 = vperm.xlu1 %670, %v48_v12   ;;  %v615_v13 = vpack.c.bf16 %v31_v10, %v30_v9  ;;  %v47_v14 = vld [vmem:[%s946_s2 + $0x8] sm:$0xff]  ;;  %v49_v15 = vld [vmem:[%s946_s2 + $0x18] sm:$0xff] }
   0x5   :  { %608 = vmatpush3.bf16.xpose.msk.msra.mxu0 %vm739_vm1, %v603_v4  ;;  %52 = vperm.xlu0 %669, %v46_v11   ;;  %v224_v16 = vld [vmem:[%s947_s4] sm:$0xff]  ;;  %v32_v17 = vld [vmem:[%s944_s0 + $0x30] sm:$0xff]  ;;  %v33_v18 = vld [vmem:[%s944_s0 + $0x38] sm:$0xff] }
   0x6   :  { %611 = vmatprep.subr.msk.bf16.mxu0 %vm739_vm1, %v609_v7  ;;  %v225_v19 = vld [vmem:[%s947_s4 + $0x8] sm:$0xff]  ;;  %v621_v20 = vpack.c.bf16 %v33_v18, %v32_v17  ;;  %v226_v21 = vld [vmem:[%s947_s4 + $0x10] sm:$0xff]  ;;  %v227_v22 = vld [vmem:[%s947_s4 + $0x18] sm:$0xff] }
   0x7   :  { %v351_v23 = vld [vmem:[%s948_s6] sm:$0xff]  ;;  %v35_v25 = vld [vmem:[%s944_s0 + $0x48] sm:$0xff]  ;;  %v36_v27 = vld [vmem:[%s944_s0 + $0x50] sm:$0xff] }
   0x8   :  { %67 = vperm.xlu1 %670, %v49_v15   ;;  %v34_v24 = vld [vmem:[%s944_s0 + $0x40] sm:$0xff]  ;;  %v37_v28 = vld [vmem:[%s944_s0 + $0x58] sm:$0xff]  ;;  %v39_v31 = vld [vmem:[%s944_s0 + $0x68] sm:$0xff] }
   0x9   :  { %57 = vperm.xlu0 %669, %v47_v14   ;;  %v627_v26 = vpack.c.bf16 %v35_v25, %v34_v24  ;;  %v633_v29 = vpack.c.bf16 %v37_v28, %v36_v27  ;;  %v38_v30 = vld [vmem:[%s944_s0 + $0x60] sm:$0xff]  ;;  %v40_v33 = vld [vmem:[%s944_s0 + $0x70] sm:$0xff]  ;;  %v41_v34 = vld [vmem:[%s944_s0 + $0x78] sm:$0xff] }
   0xa   :  { %v639_v32 = vpack.c.bf16 %v39_v31, %v38_v30  ;;  %v645_v35 = vpack.c.bf16 %v41_v34, %v40_v33  ;;  %v43_v36 = vld [vmem:[%s945_s1 + $0x8] sm:$0xff]  ;;  %v44_v37 = vld [vmem:[%s945_s1 + $0x10] sm:$0xff]  ;;  %v45_v38 = vld [vmem:[%s945_s1 + $0x18] sm:$0xff] }
   0xb   :  { %v220_v39 = vld [vmem:[%s949_s3] sm:$0xff]  ;;  %v221_v58 = vld [vmem:[%s949_s3 + $0x8] sm:$0xff]  ;;  %v222_v59 = vld [vmem:[%s949_s3 + $0x10] sm:$0xff] }
   0xc   :  { %235 = vperm.xlu1 %670, %v225_v19   ;;  %586 = vmatprep.mubr.msk.f32.mxu1 %vm248_vm2, %v220_v39  ;;  %v223_v60 = vld [vmem:[%s949_s3 + $0x18] sm:$0xff]  ;;  %v350_v17 = vld [vmem:[%s950_s5] sm:$0xff] }
   0xd   :  { %614 = vmatpush3.bf16.xpose.msk.msra.mxu0 %vm739_vm1, %v609_v7  ;;  %230 = vperm.xlu0 %669, %v224_v16  }
   0xe   :  { %617 = vmatprep.subr.msk.bf16.mxu0 %vm739_vm1, %v615_v13 }
  0x10   :  { %245 = vperm.xlu1 %670, %v227_v22  }
  0x11   :  { %240 = vperm.xlu0 %669, %v226_v21  }
  0x15   :  { %620 = vmatpush3.bf16.xpose.msk.msra.mxu0 %vm739_vm1, %v615_v13  ;;  %354 = vperm.xlu0 %669, %v351_v23  }
  0x16   :  { %623 = vmatprep.subr.msk.bf16.mxu0 %vm739_vm1, %v621_v20 }
  0x1d   :  { %626 = vmatpush3.bf16.xpose.msk.msra.mxu0 %vm739_vm1, %v621_v20 }
  0x1e   :  { %629 = vmatprep.subr.msk.bf16.mxu0 %vm739_vm1, %v627_v26 }
  0x25   :  { %632 = vmatpush3.bf16.xpose.msk.msra.mxu0 %vm739_vm1, %v627_v26 }
  0x26   :  { %635 = vmatprep.subr.msk.bf16.mxu0 %vm739_vm1, %v633_v29 }
  0x2d   :  { %638 = vmatpush3.bf16.xpose.msk.msra.mxu0 %vm739_vm1, %v633_v29 }
  0x2e   :  { %641 = vmatprep.subr.msk.bf16.mxu0 %vm739_vm1, %v639_v32 }
  0x35   :  { %644 = vmatpush3.bf16.xpose.msk.msra.mxu0 %vm739_vm1, %v639_v32 }
  0x36   :  { %647 = vmatprep.subr.msk.bf16.mxu0 %vm739_vm1, %v645_v35 }
  0x3d   :  { %650 = vmatpush3.bf16.xpose.msk.msra.mxu0 %vm739_vm1, %v645_v35 }
  0x44   :  { %573 = vmatmul.mubr.msk.f32.vlgmr.msra.gmra.mrb[0].mxu0 %vm70_vm0, %v43_v36 }
  0x45   :  { %575 = vmatprep.mubr.msk.f32.mxu0 %vm70_vm0, %v44_v37 }
  0x48   :  { %576 = vmatmul.mubr.msk.f32.gmra.mrb[2].mxu0 %vm70_vm0, %v45_v38 }
  0x83   :  { %v63_v41 = vpop.permute.xlu1 %62 }
  0x84   :  { %v53_v40 = vpop.permute.xlu0 %52 }
  0x87   :  { %v68_v47 = vpop.permute.xlu1 %67 }
  0x88   :  { %v58_v42 = vpop.permute.xlu0 %57 }
  0x8b   :  { %v236_v63 = vpop.permute.xlu1 %235 }
  0x8c   :  { %v231_v0 = vpop.permute.xlu0 %230 }
  0x8f   :  { %v246_v5 = vpop.permute.xlu1 %245 }
  0x90   :  { %v241_v7 = vpop.permute.xlu0 %240 }
  0x94   :  { %v355_v18 = vpop.permute.xlu0 %354 }
 0x117   :  { %v574_v43 = vpop.f32.mrb[0].mxu0 }
 0x118   :  { %v203_v44 = vadd.f32 %v574_v43, %v58_v42  ;;  %v197_v45 = vpop.f32.mrb[1].mxu0 }
 0x119   :  { %v198_v46 = vadd.f32 %v197_v45, %v53_v40 }
 0x11a   :  { %671 = vtanh.f32 %v203_v44 }
 0x11b   :  { %673 = vtanh.f32 %v198_v46  ;;  %v577_v48 = vpop.f32.mrb[2].mxu0 }
 0x11c   :  { %v213_v49 = vadd.f32 %v577_v48, %v68_v47  ;;  %v207_v50 = vpop.f32.mrb[3].mxu0 }
 0x11d   :  { %v208_v51 = vadd.f32 %v207_v50, %v63_v41 }
 0x11e   :  { %675 = vtanh.f32 %v213_v49 }
 0x11f   :  { %677 = vtanh.f32 %v208_v51 }
 0x124   :  { %v672_v52 = vpop.eup %671 }
 0x125   :  { %v674_v53 = vpop.eup %673 }
 0x126   :  { %v651_v54 = vpack.c.bf16 %v672_v52, %v674_v53 }
 0x128   :  { %v676_v55 = vpop.eup %675  ;;  %652 = vmatprep.subr.bf16.mxu1 %v651_v54 }
 0x129   :  { %v678_v56 = vpop.eup %677  ;;  %654 = vmatpush3.bf16.msra.mxu1 %v651_v54 }
 0x12a   :  { %v655_v57 = vpack.c.bf16 %v676_v55, %v678_v56 }
 0x12c   :  { %656 = vmatprep.subr.bf16.mxu1 %v655_v57 }
 0x12d   :  { %658 = vmatpush3.bf16.msra.mxu1 %v655_v57 }
 0x12e   :  { %659 = vmatprep.subr.bf16.mxu1 %v688_v61 }
 0x130   :  { %587 = vmatmul.mubr.msk.f32.vlgmr.msra.gmra.mrb[0].mxu1 %vm248_vm2, %v221_v58 }
 0x131   :  { %589 = vmatprep.mubr.msk.f32.mxu1 %vm248_vm2, %v222_v59 }
 0x134   :  { %590 = vmatmul.mubr.msk.f32.gmra.mrb[2].mxu1 %vm248_vm2, %v223_v60 }
 0x135   :  { %600 = vmatprep.mubr.msk.f32.mxu1 %vm689_vm3, %v690_v62 }
 0x203   :  { %v588_v1 = vpop.f32.mrb[0].mxu1 }
 0x204   :  { %v333_v2 = vadd.f32 %v588_v1, %v236_v63  ;;  %v327_v3 = vpop.f32.mrb[1].mxu1 }
 0x205   :  { %v328_v4 = vadd.f32 %v327_v3, %v231_v0 }
 0x206   :  { %679 = vtanh.f32 %v333_v2 }
 0x207   :  { %681 = vtanh.f32 %v328_v4  ;;  %v591_v6 = vpop.f32.mrb[2].mxu1 }
 0x208   :  { %v343_v8 = vadd.f32 %v591_v6, %v246_v5  ;;  %v337_v9 = vpop.f32.mrb[3].mxu1 }
 0x209   :  { %v338_v10 = vadd.f32 %v337_v9, %v241_v7 }
 0x20a   :  { %683 = vtanh.f32 %v343_v8 }
 0x20b   :  { %685 = vtanh.f32 %v338_v10 }
 0x210   :  { %v680_v11 = vpop.eup %679 }
 0x211   :  { %v682_v12 = vpop.eup %681 }
 0x212   :  { %v660_v13 = vpack.c.bf16 %v680_v11, %v682_v12 }
 0x214   :  { %v684_v14 = vpop.eup %683  ;;  %661 = vmatpush3.bf16.msra.mxu1 %v660_v13 }
 0x215   :  { %v686_v15 = vpop.eup %685  ;;  %662 = vmatprep.subr.bf16.mxu1 %v688_v61 }
 0x216   :  { %v663_v16 = vpack.c.bf16 %v684_v14, %v686_v15 }
 0x218   :  { %664 = vmatpush3.bf16.msra.mxu1 %v663_v16 }
 0x21b   :  { %601 = vmatmul.mubr.msk.f32.vlgmr.msra.gmra.mrb[4].mxu1 %vm248_vm2, %v350_v17 }
 0x2ee   :  { %v426_v19 = vpop.f32.mrb[4].mxu1 }
 0x2ef   :  { %v427_v20 = vadd.f32 %v426_v19, %v355_v18  ;;  %v602_v21 = vpop.f32.mrb[5].mxu1 }
 0x2f1   :  { %430 = vxpose.xlu1.b32.start.end [1/1] (short) %v427_v20, 128 }
 0x371   :  { %v446_v22 = vpop.trf.xlu1 }
 0x372   :  { %462 = vst.msk [vmem:[%s951_s7] sm:$0xff] %vm70_vm0, %v446_v22 }
 0x375   :  { %v447_v23 = vpop.trf.xlu1 }
 0x376   :  { %463 = vst.msk [vmem:[%s951_s7 + $0x8] sm:$0xff] %vm70_vm0, %v447_v23 }
 0x379   :  { %v448_v24 = vpop.trf.xlu1 }
 0x37a   :  { %464 = vst.msk [vmem:[%s951_s7 + $0x10] sm:$0xff] %vm70_vm0, %v448_v24 }
 0x37d   :  { %v449_v25 = vpop.trf.xlu1 }
 0x37e   :  { %465 = vst.msk [vmem:[%s951_s7 + $0x18] sm:$0xff] %vm70_vm0, %v449_v25 }
 0x381   :  { %v450_v26 = vpop.trf.xlu1 }
 0x382   :  { %466 = vst.msk [vmem:[%s951_s7 + $0x20] sm:$0xff] %vm70_vm0, %v450_v26 }
 0x385   :  { %v451_v27 = vpop.trf.xlu1 }
 0x386   :  { %467 = vst.msk [vmem:[%s951_s7 + $0x28] sm:$0xff] %vm70_vm0, %v451_v27 }
 0x389   :  { %v452_v28 = vpop.trf.xlu1 }
 0x38a   :  { %468 = vst.msk [vmem:[%s951_s7 + $0x30] sm:$0xff] %vm70_vm0, %v452_v28 }
 0x38d   :  { %v453_v29 = vpop.trf.xlu1 }
 0x38e   :  { %469 = vst.msk [vmem:[%s951_s7 + $0x38] sm:$0xff] %vm70_vm0, %v453_v29 }
 0x391   :  { %v454_v30 = vpop.trf.xlu1 }
 0x392   :  { %470 = vst.msk [vmem:[%s951_s7 + $0x40] sm:$0xff] %vm70_vm0, %v454_v30 }
 0x395   :  { %v455_v31 = vpop.trf.xlu1 }
 0x396   :  { %471 = vst.msk [vmem:[%s951_s7 + $0x48] sm:$0xff] %vm70_vm0, %v455_v31 }
 0x399   :  { %v456_v32 = vpop.trf.xlu1 }
 0x39a   :  { %472 = vst.msk [vmem:[%s951_s7 + $0x50] sm:$0xff] %vm70_vm0, %v456_v32 }
 0x39d   :  { %v457_v33 = vpop.trf.xlu1 }
 0x39e   :  { %473 = vst.msk [vmem:[%s951_s7 + $0x58] sm:$0xff] %vm70_vm0, %v457_v33 }
 0x3a1   :  { %v458_v34 = vpop.trf.xlu1 }
 0x3a2   :  { %474 = vst.msk [vmem:[%s951_s7 + $0x60] sm:$0xff] %vm70_vm0, %v458_v34 }
 0x3a5   :  { %v459_v35 = vpop.trf.xlu1 }
 0x3a6   :  { %475 = vst.msk [vmem:[%s951_s7 + $0x68] sm:$0xff] %vm70_vm0, %v459_v35 }
 0x3a9   :  { %v460_v36 = vpop.trf.xlu1 }
 0x3aa   :  { %476 = vst.msk [vmem:[%s951_s7 + $0x70] sm:$0xff] %vm70_vm0, %v460_v36 }
 0x3ad   :  { %v461_v37 = vpop.trf.xlu1 }
 0x3ae   :  { %477 = vst.msk [vmem:[%s951_s7 + $0x78] sm:$0xff] %vm70_vm0, %v461_v37 }

</bundles_post_ra>
